<compile_context>
chip_gen: v5e
topology: v5e:2x2
jax: 0.10.0
libtpu: 0.0.40
codegen_flags: <defaults>
</compile_context>

<pallas_src>
import functools

import jax
import jax.numpy as jnp
from jax.experimental import pallas as pl
from jax.experimental.pallas import tpu as pltpu

LN_EPS = 1e-6          # Annotated-Transformer LayerNorm eps
MASK_NEG = -1e9        # masked_fill value, matches the PyTorch reference


# ----------------------------------------------------------------------------
# Per-generation tuning helpers (review: set vmem_limit_bytes everywhere; grow
# row tiles on 128-MiB parts, cap them on v7x's 64 MiB).
# ----------------------------------------------------------------------------
@functools.lru_cache(maxsize=None)
def _vmem_limit_bytes():
    try:
        # ~80% of physical VMEM: ≈102 MiB on v5e/v6e (128 MiB), ≈52 MiB on v7x.
        return int(pltpu.get_tpu_info().vmem_capacity_bytes * 0.8)
    except Exception:
        return 64 * 1024 * 1024  # conservative fallback


def _compiler_params(dimension_semantics):
    return pltpu.CompilerParams(
        dimension_semantics=dimension_semantics,
        vmem_limit_bytes=_vmem_limit_bytes())


@functools.lru_cache(maxsize=None)
def _default_block_m():
    # Bigger row tiles where VMEM allows it (halves weight re-streaming).
    return 1024 if _vmem_limit_bytes() >= 96 * 1024 * 1024 else 512


# ----------------------------------------------------------------------------
# Kernel 1: fused LayerNorm1 + fused Q/K/V projection (single (D, 3D) matmul).
# Grid over row tiles of the flattened (B*S, D) activation; weights resident.
# TODO(synk): single-buffer the grid-invariant weight block via
#             pipeline_mode=pl.Buffered(1) once verified on the target JAX,
#             and add a K-reduction axis for very large D.
# ----------------------------------------------------------------------------
def ln_qkv_kernel(x_ref, g_ref, b_ref, wqkv_ref, bqkv_ref, qkv_ref):
    x = x_ref[...].astype(jnp.float32)
    mean = jnp.mean(x, axis=-1, keepdims=True)
    var = jnp.mean(jnp.square(x - mean), axis=-1, keepdims=True)
    xn = (x - mean) * jax.lax.rsqrt(var + LN_EPS)
    xn = xn * g_ref[...].astype(jnp.float32) + b_ref[...].astype(jnp.float32)
    xn = xn.astype(wqkv_ref.dtype)            # bf16 MXU operand
    qkv = jnp.dot(xn, wqkv_ref[...], preferred_element_type=jnp.float32)
    qkv_ref[...] = (qkv + bqkv_ref[...].astype(jnp.float32)).astype(qkv_ref.dtype)


def ln_qkv(x2, g, b, wqkv, bqkv, *, out_dtype, block_m=None):
    M, D = x2.shape
    D3 = wqkv.shape[1]
    tm = min(M, block_m if block_m is not None else _default_block_m())
    grid = (pl.cdiv(M, tm),)

    row_in = pl.BlockSpec((tm, D), lambda i: (i, 0))
    row_out = pl.BlockSpec((tm, D3), lambda i: (i, 0))

    def full(shape):
        return pl.BlockSpec(shape, lambda i: (0,) * len(shape))

    return pl.pallas_call(
        ln_qkv_kernel,
        grid=grid,
        in_specs=[row_in, full((1, D)), full((1, D)), full((D, D3)), full((1, D3))],
        out_specs=row_out,
        out_shape=jax.ShapeDtypeStruct((M, D3), out_dtype),
        compiler_params=_compiler_params(("parallel",)),
    )(x2, g.reshape(1, -1), b.reshape(1, -1), wqkv, bqkv.reshape(1, -1))


# ----------------------------------------------------------------------------
# Kernel 2: flash-style multi-head self-attention.
# Grid (B, H, q_tiles, kv_tiles); kv is the trailing 'arbitrary' reduction axis
# with online-softmax m/l/acc scratch. Per-head (tile, Dh) blocks come straight
# from BlockSpec on a (B, H, S, Dh) layout (no in-kernel lane slicing); the
# score matmul contracts last dims via lax.dot_general (no kh.T relayout); the
# key mask is applied in-kernel with jnp.where (PyTorch masked_fill semantics).
# ----------------------------------------------------------------------------
def flash_attn_kernel(q_ref, k_ref, v_ref, mask_ref, o_ref,
                      m_sc, l_sc, acc_sc, *, scale):
    kv = pl.program_id(3)

    @pl.when(kv == 0)
    def _():
        m_sc[...] = jnp.full_like(m_sc, -jnp.inf)
        l_sc[...] = jnp.zeros_like(l_sc)
        acc_sc[...] = jnp.zeros_like(acc_sc)

    q = q_ref[...]                              # (tq, Dh)
    k = k_ref[...]                              # (tk, Dh)
    s = jax.lax.dot_general(q, k, (((1,), (1,)), ((), ())),
                            preferred_element_type=jnp.float32) * scale
    mask_blk = mask_ref[...]                    # (1, tk); 1 = attend, 0 = masked
    s = jnp.where(mask_blk > 0, s, jnp.float32(MASK_NEG))

    m_prev = m_sc[...]
    m_new = jnp.maximum(m_prev, jnp.max(s, axis=-1, keepdims=True))
    alpha = jnp.exp(m_prev - m_new)
    p = jnp.exp(s - m_new)
    l_sc[...] = alpha * l_sc[...] + jnp.sum(p, axis=-1, keepdims=True)
    acc_sc[...] = alpha * acc_sc[...] + jnp.dot(
        p.astype(v_ref.dtype), v_ref[...], preferred_element_type=jnp.float32)
    m_sc[...] = m_new

    @pl.when(kv == pl.num_programs(3) - 1)
    def _():
        # Exact divide (not approx reciprocal) for closer parity with PyTorch.
        o_ref[...] = (acc_sc[...] / l_sc[...]).astype(o_ref.dtype)


def multihead_attention(q, k, v, mask, *, block_q=512, block_kv=512):
    """q/k/v: (B, H, S, Dh); mask: (B, 1, S). Returns (B, H, S, Dh)."""
    B, H, S, Dh = q.shape
    tq = min(S, block_q)
    tk = min(S, block_kv)
    # TODO(synk): support ragged S (non-divisible tiles) via a kv-length mask.
    assert S % tq == 0 and S % tk == 0
    scale = 1.0 / (float(Dh) ** 0.5)

    kern = functools.partial(flash_attn_kernel, scale=scale)
    grid = (B, H, S // tq, S // tk)

    q_spec = pl.BlockSpec((None, None, tq, Dh), lambda b, h, qi, kv: (b, h, qi, 0))
    kv_spec = pl.BlockSpec((None, None, tk, Dh), lambda b, h, qi, kv: (b, h, kv, 0))
    mask_spec = pl.BlockSpec((None, 1, tk), lambda b, h, qi, kv: (b, 0, kv))

    return pl.pallas_call(
        kern,
        grid=grid,
        in_specs=[q_spec, kv_spec, kv_spec, mask_spec],
        out_specs=q_spec,
        out_shape=jax.ShapeDtypeStruct((B, H, S, Dh), q.dtype),
        scratch_shapes=[pltpu.VMEM((tq, 1), jnp.float32),     # m (running max)
                        pltpu.VMEM((tq, 1), jnp.float32),     # l (running denom)
                        pltpu.VMEM((tq, Dh), jnp.float32)],   # acc (context)
        compiler_params=_compiler_params(
            ("parallel", "parallel", "parallel", "arbitrary")),
    )(q, k, v, mask)


# ----------------------------------------------------------------------------
# Kernel 3: fused attn-out-projection + residual + LayerNorm2 + FFN + residual.
# Grid (row_tiles, DFF_tiles): the FFN hidden dim is streamed in (D, tdff) /
# (tdff, D) weight tiles with a (tm, D) f32 accumulator; proj + LN run once per
# row tile (at dff step 0) and are stashed in VMEM scratch, so w1/w2 never need
# to be fully resident (fits v7x's 64 MiB) and weight DMA overlaps MXU work.
# TODO(synk): single-buffer the grid-invariant wo/bias blocks via
#             pipeline_mode=pl.Buffered(1) once verified on the target JAX.
# ----------------------------------------------------------------------------
def proj_ffn_kernel(attn_ref, res_ref, wo_ref, bo_ref, g_ref, b_ref,
                    w1_ref, b1_ref, w2_ref, b2_ref, o_ref,
                    y_sc, xn_sc, acc_sc):
    j = pl.program_id(1)

    @pl.when(j == 0)
    def _():
        # y = attn @ Wo + bo + residual   (f32)
        y = (jnp.dot(attn_ref[...], wo_ref[...], preferred_element_type=jnp.float32)
             + bo_ref[...].astype(jnp.float32)
             + res_ref[...].astype(jnp.float32))
        y_sc[...] = y
        # LayerNorm2(y)
        mean = jnp.mean(y, axis=-1, keepdims=True)
        var = jnp.mean(jnp.square(y - mean), axis=-1, keepdims=True)
        xn = (y - mean) * jax.lax.rsqrt(var + LN_EPS)
        xn = xn * g_ref[...].astype(jnp.float32) + b_ref[...].astype(jnp.float32)
        xn_sc[...] = xn.astype(xn_sc.dtype)      # bf16 MXU operand
        acc_sc[...] = jnp.zeros_like(acc_sc)

    # FFN tile: relu(xn @ w1[:, tile] + b1[tile]) @ w2[tile, :]  (accumulated)
    h = (jnp.dot(xn_sc[...], w1_ref[...], preferred_element_type=jnp.float32)
         + b1_ref[...].astype(jnp.float32))
    h = jnp.maximum(h, 0.0).astype(w2_ref.dtype)
    acc_sc[...] += jnp.dot(h, w2_ref[...], preferred_element_type=jnp.float32)

    @pl.when(j == pl.num_programs(1) - 1)
    def _():
        o_ref[...] = (acc_sc[...] + b2_ref[...].astype(jnp.float32)
                      + y_sc[...]).astype(o_ref.dtype)


def proj_ffn(attn2, res2, wo, bo, g, b, w1, b1, w2, b2, *,
             out_dtype, block_m=None, block_dff=512):
    M, D = attn2.shape
    DFF = w1.shape[1]
    tm = min(M, block_m if block_m is not None else _default_block_m())
    tdff = min(DFF, block_dff)
    assert DFF % tdff == 0
    grid = (pl.cdiv(M, tm), DFF // tdff)

    row = pl.BlockSpec((tm, D), lambda i, j: (i, 0))

    def full(shape):
        return pl.BlockSpec(shape, lambda i, j: (0,) * len(shape))

    w1_spec = pl.BlockSpec((D, tdff), lambda i, j: (0, j))
    b1_spec = pl.BlockSpec((1, tdff), lambda i, j: (0, j))
    w2_spec = pl.BlockSpec((tdff, D), lambda i, j: (j, 0))

    # Note: no input_output_aliases here — the attention temp is bf16 while the
    # output is the residual dtype, and aliasing the residual would clobber a
    # (possibly non-donated) jit input.
    return pl.pallas_call(
        proj_ffn_kernel,
        grid=grid,
        in_specs=[row, row,
                  full((D, D)), full((1, D)), full((1, D)), full((1, D)),
                  w1_spec, b1_spec, w2_spec, full((1, D))],
        out_specs=row,
        out_shape=jax.ShapeDtypeStruct((M, D), out_dtype),
        scratch_shapes=[pltpu.VMEM((tm, D), jnp.float32),   # y  (proj + residual)
                        pltpu.VMEM((tm, D), w1.dtype),      # xn (LN2 output, bf16)
                        pltpu.VMEM((tm, D), jnp.float32)],  # FFN accumulator
        compiler_params=_compiler_params(("parallel", "arbitrary")),
    )(attn2, res2, wo, bo.reshape(1, -1), g.reshape(1, -1), b.reshape(1, -1),
      w1, b1.reshape(1, -1), w2, b2.reshape(1, -1))


# ----------------------------- EncoderLayer forward --------------------------
@functools.partial(jax.jit, static_argnames=("num_heads", "mxu_dtype"))
def encoder_layer_forward(x, mask, params, num_heads, mxu_dtype=jnp.bfloat16):
    """x: (B, S, D), mask: (B, 1, S) with 1 = attend, 0 = masked. -> (B, S, D)."""
    B, S, D = x.shape
    H = num_heads
    assert D % H == 0
    Dh = D // H

    x2 = x.reshape(B * S, D)                      # free contiguous reshape

    # MXU operands in bf16 (review); LN/softmax/residual math stays f32.
    wqkv = jnp.concatenate([params["wq"], params["wk"], params["wv"]],
                           axis=1).astype(mxu_dtype)
    bqkv = jnp.concatenate([params["bq"], params["bk"], params["bv"]])

    # --- sublayer 0: x + SelfAttn(LayerNorm1(x)) ---   (dropout = identity)
    qkv = ln_qkv(x2, params["ln1_g"], params["ln1_b"], wqkv, bqkv,
                 out_dtype=mxu_dtype)             # (B*S, 3D) bf16

    def split_heads(t):                           # layout plumbing (XLA side)
        return t.reshape(B, S, H, Dh).transpose(0, 2, 1, 3)   # (B, H, S, Dh)

    q = split_heads(qkv[:, 0:D])
    k = split_heads(qkv[:, D:2 * D])
    v = split_heads(qkv[:, 2 * D:3 * D])

    attn = multihead_attention(q, k, v, mask)     # (B, H, S, Dh) bf16
    attn2 = attn.transpose(0, 2, 1, 3).reshape(B * S, D)

    # --- sublayer 1 (fused): out-proj + residual + LN2 + FFN + residual ---
    out2 = proj_ffn(attn2, x2,
                    params["wo"].astype(mxu_dtype), params["bo"],
                    params["ln2_g"], params["ln2_b"],
                    params["w1"].astype(mxu_dtype), params["b1"],
                    params["w2"].astype(mxu_dtype), params["b2"],
                    out_dtype=x.dtype)
    return out2.reshape(B, S, D)


def init_params(key, d_model, d_ff):
    ks = jax.random.split(key, 6)
    s = 0.02
    return {
        "wq": s * jax.random.normal(ks[0], (d_model, d_model), jnp.float32),
        "wk": s * jax.random.normal(ks[1], (d_model, d_model), jnp.float32),
        "wv": s * jax.random.normal(ks[2], (d_model, d_model), jnp.float32),
        "wo": s * jax.random.normal(ks[3], (d_model, d_model), jnp.float32),
        "bq": jnp.zeros((d_model,), jnp.float32),
        "bk": jnp.zeros((d_model,), jnp.float32),
        "bv": jnp.zeros((d_model,), jnp.float32),
        "bo": jnp.zeros((d_model,), jnp.float32),
        "w1": s * jax.random.normal(ks[4], (d_model, d_ff), jnp.float32),
        "b1": jnp.zeros((d_ff,), jnp.float32),
        "w2": s * jax.random.normal(ks[5], (d_ff, d_model), jnp.float32),
        "b2": jnp.zeros((d_model,), jnp.float32),
        "ln1_g": jnp.ones((d_model,), jnp.float32),
        "ln1_b": jnp.zeros((d_model,), jnp.float32),
        "ln2_g": jnp.ones((d_model,), jnp.float32),
        "ln2_b": jnp.zeros((d_model,), jnp.float32),
    }


if __name__ == "__main__":
    B, S, D, H, DFF = 2, 8, 32, 4, 64
    key = jax.random.PRNGKey(0)
    kx, kp = jax.random.split(key)

    x = jax.random.normal(kx, (B, S, D), jnp.float32)
    # mask: 1 = attend, 0 = masked; mask out last 2 key positions of batch 1
    mask = jnp.ones((B, 1, S), jnp.float32)
    mask = mask.at[1, 0, -2:].set(0.0)

    params = init_params(kp, D, DFF)

    out = encoder_layer_forward(x, mask, params, num_heads=H,
                                mxu_dtype=jnp.bfloat16)
    out = jax.block_until_ready(out)

    assert out.shape == (B, S, D)
    assert bool(jnp.all(jnp.isfinite(out)))
    print("KERNEL_OK")
</pallas_src>

<mosaic_0001>
module attributes {stable_mosaic.version = 11 : i64} {
  func.func @ln_qkv_kernel(%arg0: i32, %arg1: memref<16x32xf32, #tpu.memory_space<vmem>>, %arg2: memref<1x32xf32, #tpu.memory_space<vmem>>, %arg3: memref<1x32xf32, #tpu.memory_space<vmem>>, %arg4: memref<32x96xbf16, #tpu.memory_space<vmem>>, %arg5: memref<1x96xf32, #tpu.memory_space<vmem>>, %arg6: memref<16x96xbf16, #tpu.memory_space<vmem>>) attributes {dimension_semantics = [#tpu.dimension_semantics<parallel>], iteration_bounds = array<i64: 1>, scalar_prefetch = 0 : i64, scratch_operands = 0 : i64, tpu.core_type = #tpu.core_type<tc>, window_params = [{transform_indices = @transform_0, window_bounds = array<i64: 16, 32>}, {pipeline_mode = #tpu.pipeline_mode<synchronous>, transform_indices = @transform_1, window_bounds = array<i64: 1, 32>}, {pipeline_mode = #tpu.pipeline_mode<synchronous>, transform_indices = @transform_2, window_bounds = array<i64: 1, 32>}, {pipeline_mode = #tpu.pipeline_mode<synchronous>, transform_indices = @transform_3, window_bounds = array<i64: 32, 96>}, {pipeline_mode = #tpu.pipeline_mode<synchronous>, transform_indices = @transform_4, window_bounds = array<i64: 1, 96>}, {transform_indices = @transform_5, window_bounds = array<i64: 16, 96>}]} {
    %c0 = arith.constant 0 : index
    %c0_0 = arith.constant 0 : index
    %0 = vector.load %arg1[%c0, %c0_0] : memref<16x32xf32, #tpu.memory_space<vmem>>, vector<16x32xf32>
    %cst = arith.constant dense<0.000000e+00> : vector<16xf32>
    %1 = vector.multi_reduction <add>, %0, %cst [1] : vector<16x32xf32> to vector<16xf32>
    %2 = vector.shape_cast %1 : vector<16xf32> to vector<16x1xf32>
    %cst_1 = arith.constant 3.200000e+01 : f32
    %3 = vector.broadcast %cst_1 : f32 to vector<16x1xf32>
    %4 = arith.divf %2, %3 : vector<16x1xf32>
    %5 = vector.broadcast %4 : vector<16x1xf32> to vector<16x32xf32>
    %6 = arith.subf %0, %5 : vector<16x32xf32>
    %7 = arith.mulf %6, %6 : vector<16x32xf32>
    %cst_2 = arith.constant dense<0.000000e+00> : vector<16xf32>
    %8 = vector.multi_reduction <add>, %7, %cst_2 [1] : vector<16x32xf32> to vector<16xf32>
    %9 = vector.shape_cast %8 : vector<16xf32> to vector<16x1xf32>
    %cst_3 = arith.constant 3.200000e+01 : f32
    %10 = vector.broadcast %cst_3 : f32 to vector<16x1xf32>
    %11 = arith.divf %9, %10 : vector<16x1xf32>
    %12 = vector.broadcast %4 : vector<16x1xf32> to vector<16x32xf32>
    %13 = arith.subf %0, %12 : vector<16x32xf32>
    %cst_4 = arith.constant 9.99999997E-7 : f32
    %14 = vector.broadcast %cst_4 : f32 to vector<16x1xf32>
    %15 = arith.addf %11, %14 : vector<16x1xf32>
    %16 = math.rsqrt %15 : vector<16x1xf32>
    %17 = vector.broadcast %16 : vector<16x1xf32> to vector<16x32xf32>
    %18 = arith.mulf %13, %17 : vector<16x32xf32>
    %c0_5 = arith.constant 0 : index
    %c0_6 = arith.constant 0 : index
    %19 = vector.load %arg2[%c0_5, %c0_6] : memref<1x32xf32, #tpu.memory_space<vmem>>, vector<1x32xf32>
    %20 = vector.broadcast %19 : vector<1x32xf32> to vector<16x32xf32>
    %21 = arith.mulf %18, %20 : vector<16x32xf32>
    %c0_7 = arith.constant 0 : index
    %c0_8 = arith.constant 0 : index
    %22 = vector.load %arg3[%c0_7, %c0_8] : memref<1x32xf32, #tpu.memory_space<vmem>>, vector<1x32xf32>
    %23 = vector.broadcast %22 : vector<1x32xf32> to vector<16x32xf32>
    %24 = arith.addf %21, %23 : vector<16x32xf32>
    %25 = arith.truncf %24 : vector<16x32xf32> to vector<16x32xbf16>
    %c0_9 = arith.constant 0 : index
    %c0_10 = arith.constant 0 : index
    %26 = vector.load %arg4[%c0_9, %c0_10] : memref<32x96xbf16, #tpu.memory_space<vmem>>, vector<32x96xbf16>
    %cst_11 = arith.constant dense<0.000000e+00> : vector<16x96xf32>
    %27 = tpu.matmul %25, %26, %cst_11 {dimension_numbers = #tpu.dot_dimension_numbers<[1], [0], [0], [1], [0, 0, 1, 1], [], []>} : vector<16x32xbf16>, vector<32x96xbf16>, vector<16x96xf32> -> vector<16x96xf32>
    %c0_12 = arith.constant 0 : index
    %c0_13 = arith.constant 0 : index
    %28 = vector.load %arg5[%c0_12, %c0_13] : memref<1x96xf32, #tpu.memory_space<vmem>>, vector<1x96xf32>
    %29 = vector.broadcast %28 : vector<1x96xf32> to vector<16x96xf32>
    %30 = arith.addf %27, %29 : vector<16x96xf32>
    %31 = arith.truncf %30 : vector<16x96xf32> to vector<16x96xbf16>
    %c0_14 = arith.constant 0 : index
    %c0_15 = arith.constant 0 : index
    %32 = vector.load %arg6[%c0_14, %c0_15] : memref<16x96xbf16, #tpu.memory_space<vmem>>, vector<16x96xbf16>
    tpu.vector_store %arg6[%c0_14, %c0_15], %31 {strides = array<i32>} : memref<16x96xbf16, #tpu.memory_space<vmem>>, vector<16x96xbf16>,
    return
  }
  func.func @transform_0(%arg0: i32) -> (i32, i32) {
    %c0_i32 = arith.constant 0 : i32
    %c0_i32_0 = arith.constant 0 : i32
    return %arg0, %c0_i32 : i32, i32
  }
  func.func @transform_1(%arg0: i32) -> (i32, i32) {
    %c0_i32 = arith.constant 0 : i32
    %c0_i32_0 = arith.constant 0 : i32
    %c0_i32_1 = arith.constant 0 : i32
    return %c0_i32, %c0_i32_0 : i32, i32
  }
  func.func @transform_2(%arg0: i32) -> (i32, i32) {
    %c0_i32 = arith.constant 0 : i32
    %c0_i32_0 = arith.constant 0 : i32
    %c0_i32_1 = arith.constant 0 : i32
    return %c0_i32, %c0_i32_0 : i32, i32
  }
  func.func @transform_3(%arg0: i32) -> (i32, i32) {
    %c0_i32 = arith.constant 0 : i32
    %c0_i32_0 = arith.constant 0 : i32
    %c0_i32_1 = arith.constant 0 : i32
    return %c0_i32, %c0_i32_0 : i32, i32
  }
  func.func @transform_4(%arg0: i32) -> (i32, i32) {
    %c0_i32 = arith.constant 0 : i32
    %c0_i32_0 = arith.constant 0 : i32
    %c0_i32_1 = arith.constant 0 : i32
    return %c0_i32, %c0_i32_0 : i32, i32
  }
  func.func @transform_5(%arg0: i32) -> (i32, i32) {
    %c0_i32 = arith.constant 0 : i32
    %c0_i32_0 = arith.constant 0 : i32
    return %arg0, %c0_i32 : i32, i32
  }
}

module attributes {stable_mosaic.version = 11 : i64} {
  func.func @flash_attn_kernel(%arg0: i32, %arg1: i32, %arg2: i32, %arg3: i32, %arg4: memref<1x1x8x8xbf16, #tpu.memory_space<vmem>>, %arg5: memref<1x1x8x8xbf16, #tpu.memory_space<vmem>>, %arg6: memref<1x1x8x8xbf16, #tpu.memory_space<vmem>>, %arg7: memref<1x1x8xf32, #tpu.memory_space<vmem>>, %arg8: memref<1x1x8x8xbf16, #tpu.memory_space<vmem>>, %arg9: memref<8x1xf32, #tpu.memory_space<vmem>>, %arg10: memref<8x1xf32, #tpu.memory_space<vmem>>, %arg11: memref<8x8xf32, #tpu.memory_space<vmem>>) attributes {dimension_semantics = [#tpu.dimension_semantics<parallel>, #tpu.dimension_semantics<parallel>, #tpu.dimension_semantics<parallel>, #tpu.dimension_semantics<arbitrary>], iteration_bounds = array<i64: 2, 4, 1, 1>, scalar_prefetch = 0 : i64, scratch_operands = 3 : i64, tpu.core_type = #tpu.core_type<tc>, window_params = [{transform_indices = @transform_0, window_bounds = array<i64: 1, 1, 8, 8>}, {transform_indices = @transform_1, window_bounds = array<i64: 1, 1, 8, 8>}, {transform_indices = @transform_2, window_bounds = array<i64: 1, 1, 8, 8>}, {transform_indices = @transform_3, window_bounds = array<i64: 1, 1, 8>}, {transform_indices = @transform_4, window_bounds = array<i64: 1, 1, 8, 8>}]} {
    %c0_i32 = arith.constant 0 : i32
    %0 = arith.cmpi eq, %arg3, %c0_i32 : i32
    %1 = arith.extui %0 : i1 to i32
    %c0_i32_0 = arith.constant 0 : i32
    %2 = arith.cmpi ne, %1, %c0_i32_0 : i32
    scf.if %2 {
      %cst_35 = arith.constant 0xFF800000 : f32
      %46 = vector.broadcast %cst_35 : f32 to vector<8x1xf32>
      %c0_36 = arith.constant 0 : index
      %c0_37 = arith.constant 0 : index
      %47 = vector.load %arg9[%c0_36, %c0_37] : memref<8x1xf32, #tpu.memory_space<vmem>>, vector<8x1xf32>
      tpu.vector_store %arg9[%c0_36, %c0_37], %46 {strides = array<i32>} : memref<8x1xf32, #tpu.memory_space<vmem>>, vector<8x1xf32>,
      %cst_38 = arith.constant 0.000000e+00 : f32
      %48 = vector.broadcast %cst_38 : f32 to vector<8x1xf32>
      %c0_39 = arith.constant 0 : index
      %c0_40 = arith.constant 0 : index
      %49 = vector.load %arg10[%c0_39, %c0_40] : memref<8x1xf32, #tpu.memory_space<vmem>>, vector<8x1xf32>
      tpu.vector_store %arg10[%c0_39, %c0_40], %48 {strides = array<i32>} : memref<8x1xf32, #tpu.memory_space<vmem>>, vector<8x1xf32>,
      %cst_41 = arith.constant 0.000000e+00 : f32
      %50 = vector.broadcast %cst_41 : f32 to vector<8x8xf32>
      %c0_42 = arith.constant 0 : index
      %c0_43 = arith.constant 0 : index
      %51 = vector.load %arg11[%c0_42, %c0_43] : memref<8x8xf32, #tpu.memory_space<vmem>>, vector<8x8xf32>
      tpu.vector_store %arg11[%c0_42, %c0_43], %50 {strides = array<i32>} : memref<8x8xf32, #tpu.memory_space<vmem>>, vector<8x8xf32>,
    } else {
    }
    %c0 = arith.constant 0 : index
    %c0_1 = arith.constant 0 : index
    %c0_2 = arith.constant 0 : index
    %c0_3 = arith.constant 0 : index
    %3 = vector.load %arg4[%c0, %c0_1, %c0_2, %c0_3] : memref<1x1x8x8xbf16, #tpu.memory_space<vmem>>, vector<1x1x8x8xbf16>
    %4 = vector.shape_cast %3 : vector<1x1x8x8xbf16> to vector<8x8xbf16>
    %c0_4 = arith.constant 0 : index
    %c0_5 = arith.constant 0 : index
    %c0_6 = arith.constant 0 : index
    %c0_7 = arith.constant 0 : index
    %5 = vector.load %arg5[%c0_4, %c0_5, %c0_6, %c0_7] : memref<1x1x8x8xbf16, #tpu.memory_space<vmem>>, vector<1x1x8x8xbf16>
    %6 = vector.shape_cast %5 : vector<1x1x8x8xbf16> to vector<8x8xbf16>
    %cst = arith.constant dense<0.000000e+00> : vector<8x8xf32>
    %7 = tpu.matmul %4, %6, %cst {dimension_numbers = #tpu.dot_dimension_numbers<[1], [1], [0], [0], [0, 0, 1, 0], [], []>} : vector<8x8xbf16>, vector<8x8xbf16>, vector<8x8xf32> -> vector<8x8xf32>
    %cst_8 = arith.constant 0.353553385 : f32
    %8 = vector.broadcast %cst_8 : f32 to vector<8x8xf32>
    %9 = arith.mulf %7, %8 : vector<8x8xf32>
    %c0_9 = arith.constant 0 : index
    %c0_10 = arith.constant 0 : index
    %c0_11 = arith.constant 0 : index
    %10 = vector.load %arg7[%c0_9, %c0_10, %c0_11] : memref<1x1x8xf32, #tpu.memory_space<vmem>>, vector<1x1x8xf32>
    %11 = vector.shape_cast %10 : vector<1x1x8xf32> to vector<1x8xf32>
    %cst_12 = arith.constant 0.000000e+00 : f32
    %12 = vector.broadcast %cst_12 : f32 to vector<1x8xf32>
    %13 = arith.cmpf ogt, %11, %12 : vector<1x8xf32>
    %cst_13 = arith.constant -1.000000e+09 : f32
    %14 = vector.shape_cast %13 : vector<1x8xi1> to vector<1x8xi1>
    %15 = vector.broadcast %14 : vector<1x8xi1> to vector<8x8xi1>
    %16 = vector.broadcast %cst_13 : f32 to vector<8x8xf32>
    %17 = arith.select %15, %9, %16 : vector<8x8xi1>, vector<8x8xf32>
    %c0_14 = arith.constant 0 : index
    %c0_15 = arith.constant 0 : index
    %18 = vector.load %arg9[%c0_14, %c0_15] : memref<8x1xf32, #tpu.memory_space<vmem>>, vector<8x1xf32>
    %cst_16 = arith.constant dense<0xFF800000> : vector<8xf32>
    %19 = vector.multi_reduction <maximumf>, %17, %cst_16 [1] : vector<8x8xf32> to vector<8xf32>
    %20 = vector.shape_cast %19 : vector<8xf32> to vector<8x1xf32>
    %21 = arith.maximumf %18, %20 : vector<8x1xf32>
    %22 = arith.subf %18, %21 : vector<8x1xf32>
    %23 = math.exp %22 : vector<8x1xf32>
    %24 = vector.broadcast %21 : vector<8x1xf32> to vector<8x8xf32>
    %25 = arith.subf %17, %24 : vector<8x8xf32>
    %26 = math.exp %25 : vector<8x8xf32>
    %c0_17 = arith.constant 0 : index
    %c0_18 = arith.constant 0 : index
    %27 = vector.load %arg10[%c0_17, %c0_18] : memref<8x1xf32, #tpu.memory_space<vmem>>, vector<8x1xf32>
    %28 = arith.mulf %23, %27 : vector<8x1xf32>
    %cst_19 = arith.constant dense<0.000000e+00> : vector<8xf32>
    %29 = vector.multi_reduction <add>, %26, %cst_19 [1] : vector<8x8xf32> to vector<8xf32>
    %30 = vector.shape_cast %29 : vector<8xf32> to vector<8x1xf32>
    %31 = arith.addf %28, %30 : vector<8x1xf32>
    %c0_20 = arith.constant 0 : index
    %c0_21 = arith.constant 0 : index
    %32 = vector.load %arg10[%c0_20, %c0_21] : memref<8x1xf32, #tpu.memory_space<vmem>>, vector<8x1xf32>
    tpu.vector_store %arg10[%c0_20, %c0_21], %31 {strides = array<i32>} : memref<8x1xf32, #tpu.memory_space<vmem>>, vector<8x1xf32>,
    %c0_22 = arith.constant 0 : index
    %c0_23 = arith.constant 0 : index
    %33 = vector.load %arg11[%c0_22, %c0_23] : memref<8x8xf32, #tpu.memory_space<vmem>>, vector<8x8xf32>
    %34 = vector.broadcast %23 : vector<8x1xf32> to vector<8x8xf32>
    %35 = arith.mulf %34, %33 : vector<8x8xf32>
    %36 = arith.truncf %26 : vector<8x8xf32> to vector<8x8xbf16>
    %c0_24 = arith.constant 0 : index
    %c0_25 = arith.constant 0 : index
    %c0_26 = arith.constant 0 : index
    %c0_27 = arith.constant 0 : index
    %37 = vector.load %arg6[%c0_24, %c0_25, %c0_26, %c0_27] : memref<1x1x8x8xbf16, #tpu.memory_space<vmem>>, vector<1x1x8x8xbf16>
    %38 = vector.shape_cast %37 : vector<1x1x8x8xbf16> to vector<8x8xbf16>
    %cst_28 = arith.constant dense<0.000000e+00> : vector<8x8xf32>
    %39 = tpu.matmul %36, %38, %cst_28 {dimension_numbers = #tpu.dot_dimension_numbers<[1], [0], [0], [1], [0, 0, 1, 1], [], []>} : vector<8x8xbf16>, vector<8x8xbf16>, vector<8x8xf32> -> vector<8x8xf32>
    %40 = arith.addf %35, %39 : vector<8x8xf32>
    %c0_29 = arith.constant 0 : index
    %c0_30 = arith.constant 0 : index
    %41 = vector.load %arg11[%c0_29, %c0_30] : memref<8x8xf32, #tpu.memory_space<vmem>>, vector<8x8xf32>
    tpu.vector_store %arg11[%c0_29, %c0_30], %40 {strides = array<i32>} : memref<8x8xf32, #tpu.memory_space<vmem>>, vector<8x8xf32>,
    %c0_31 = arith.constant 0 : index
    %c0_32 = arith.constant 0 : index
    %42 = vector.load %arg9[%c0_31, %c0_32] : memref<8x1xf32, #tpu.memory_space<vmem>>, vector<8x1xf32>
    tpu.vector_store %arg9[%c0_31, %c0_32], %21 {strides = array<i32>} : memref<8x1xf32, #tpu.memory_space<vmem>>, vector<8x1xf32>,
    %c0_i32_33 = arith.constant 0 : i32
    %43 = arith.cmpi eq, %arg3, %c0_i32_33 : i32
    %44 = arith.extui %43 : i1 to i32
    %c0_i32_34 = arith.constant 0 : i32
    %45 = arith.cmpi ne, %44, %c0_i32_34 : i32
    scf.if %45 {
      %c0_35 = arith.constant 0 : index
      %c0_36 = arith.constant 0 : index
      %46 = vector.load %arg11[%c0_35, %c0_36] : memref<8x8xf32, #tpu.memory_space<vmem>>, vector<8x8xf32>
      %c0_37 = arith.constant 0 : index
      %c0_38 = arith.constant 0 : index
      %47 = vector.load %arg10[%c0_37, %c0_38] : memref<8x1xf32, #tpu.memory_space<vmem>>, vector<8x1xf32>
      %48 = vector.broadcast %47 : vector<8x1xf32> to vector<8x8xf32>
      %49 = arith.divf %46, %48 : vector<8x8xf32>
      %50 = arith.truncf %49 : vector<8x8xf32> to vector<8x8xbf16>
      %c0_39 = arith.constant 0 : index
      %c0_40 = arith.constant 0 : index
      %c0_41 = arith.constant 0 : index
      %c0_42 = arith.constant 0 : index
      %51 = vector.load %arg8[%c0_39, %c0_40, %c0_41, %c0_42] : memref<1x1x8x8xbf16, #tpu.memory_space<vmem>>, vector<1x1x8x8xbf16>
      %52 = vector.shape_cast %51 : vector<1x1x8x8xbf16> to vector<8x8xbf16>
      %53 = vector.shape_cast %50 : vector<8x8xbf16> to vector<1x1x8x8xbf16>
      tpu.vector_store %arg8[%c0_39, %c0_40, %c0_41, %c0_42], %53 {strides = array<i32>} : memref<1x1x8x8xbf16, #tpu.memory_space<vmem>>, vector<1x1x8x8xbf16>,
    } else {
    }
    return
  }
  func.func @transform_0(%arg0: i32, %arg1: i32, %arg2: i32, %arg3: i32) -> (i32, i32, i32, i32) {
    %c0_i32 = arith.constant 0 : i32
    %c0_i32_0 = arith.constant 0 : i32
    return %arg0, %arg1, %arg2, %c0_i32 : i32, i32, i32, i32
  }
  func.func @transform_1(%arg0: i32, %arg1: i32, %arg2: i32, %arg3: i32) -> (i32, i32, i32, i32) {
    %c0_i32 = arith.constant 0 : i32
    %c0_i32_0 = arith.constant 0 : i32
    return %arg0, %arg1, %arg3, %c0_i32 : i32, i32, i32, i32
  }
  func.func @transform_2(%arg0: i32, %arg1: i32, %arg2: i32, %arg3: i32) -> (i32, i32, i32, i32) {
    %c0_i32 = arith.constant 0 : i32
    %c0_i32_0 = arith.constant 0 : i32
    return %arg0, %arg1, %arg3, %c0_i32 : i32, i32, i32, i32
  }
  func.func @transform_3(%arg0: i32, %arg1: i32, %arg2: i32, %arg3: i32) -> (i32, i32, i32) {
    %c0_i32 = arith.constant 0 : i32
    %c0_i32_0 = arith.constant 0 : i32
    return %arg0, %c0_i32, %arg3 : i32, i32, i32
  }
  func.func @transform_4(%arg0: i32, %arg1: i32, %arg2: i32, %arg3: i32) -> (i32, i32, i32, i32) {
    %c0_i32 = arith.constant 0 : i32
    %c0_i32_0 = arith.constant 0 : i32
    return %arg0, %arg1, %arg2, %c0_i32 : i32, i32, i32, i32
  }
}

module attributes {stable_mosaic.version = 11 : i64} {
  func.func @proj_ffn_kernel(%arg0: i32, %arg1: i32, %arg2: memref<16x32xbf16, #tpu.memory_space<vmem>>, %arg3: memref<16x32xf32, #tpu.memory_space<vmem>>, %arg4: memref<32x32xbf16, #tpu.memory_space<vmem>>, %arg5: memref<1x32xf32, #tpu.memory_space<vmem>>, %arg6: memref<1x32xf32, #tpu.memory_space<vmem>>, %arg7: memref<1x32xf32, #tpu.memory_space<vmem>>, %arg8: memref<32x64xbf16, #tpu.memory_space<vmem>>, %arg9: memref<1x64xf32, #tpu.memory_space<vmem>>, %arg10: memref<64x32xbf16, #tpu.memory_space<vmem>>, %arg11: memref<1x32xf32, #tpu.memory_space<vmem>>, %arg12: memref<16x32xf32, #tpu.memory_space<vmem>>, %arg13: memref<16x32xf32, #tpu.memory_space<vmem>>, %arg14: memref<16x32xbf16, #tpu.memory_space<vmem>>, %arg15: memref<16x32xf32, #tpu.memory_space<vmem>>) attributes {dimension_semantics = [#tpu.dimension_semantics<parallel>, #tpu.dimension_semantics<arbitrary>], iteration_bounds = array<i64: 1, 1>, scalar_prefetch = 0 : i64, scratch_operands = 3 : i64, tpu.core_type = #tpu.core_type<tc>, window_params = [{transform_indices = @transform_0, window_bounds = array<i64: 16, 32>}, {transform_indices = @transform_1, window_bounds = array<i64: 16, 32>}, {pipeline_mode = #tpu.pipeline_mode<synchronous>, transform_indices = @transform_2, window_bounds = array<i64: 32, 32>}, {pipeline_mode = #tpu.pipeline_mode<synchronous>, transform_indices = @transform_3, window_bounds = array<i64: 1, 32>}, {pipeline_mode = #tpu.pipeline_mode<synchronous>, transform_indices = @transform_4, window_bounds = array<i64: 1, 32>}, {pipeline_mode = #tpu.pipeline_mode<synchronous>, transform_indices = @transform_5, window_bounds = array<i64: 1, 32>}, {transform_indices = @transform_6, window_bounds = array<i64: 32, 64>}, {transform_indices = @transform_7, window_bounds = array<i64: 1, 64>}, {transform_indices = @transform_8, window_bounds = array<i64: 64, 32>}, {pipeline_mode = #tpu.pipeline_mode<synchronous>, transform_indices = @transform_9, window_bounds = array<i64: 1, 32>}, {transform_indices = @transform_10, window_bounds = array<i64: 16, 32>}]} {
    %c0_i32 = arith.constant 0 : i32
    %0 = arith.cmpi eq, %arg1, %c0_i32 : i32
    %1 = arith.extui %0 : i1 to i32
    %c0_i32_0 = arith.constant 0 : i32
    %2 = arith.cmpi ne, %1, %c0_i32_0 : i32
    scf.if %2 {
      %c0_16 = arith.constant 0 : index
      %c0_17 = arith.constant 0 : index
      %20 = vector.load %arg2[%c0_16, %c0_17] : memref<16x32xbf16, #tpu.memory_space<vmem>>, vector<16x32xbf16>
      %c0_18 = arith.constant 0 : index
      %c0_19 = arith.constant 0 : index
      %21 = vector.load %arg4[%c0_18, %c0_19] : memref<32x32xbf16, #tpu.memory_space<vmem>>, vector<32x32xbf16>
      %cst_20 = arith.constant dense<0.000000e+00> : vector<16x32xf32>
      %22 = tpu.matmul %20, %21, %cst_20 {dimension_numbers = #tpu.dot_dimension_numbers<[1], [0], [0], [1], [0, 0, 1, 1], [], []>} : vector<16x32xbf16>, vector<32x32xbf16>, vector<16x32xf32> -> vector<16x32xf32>
      %c0_21 = arith.constant 0 : index
      %c0_22 = arith.constant 0 : index
      %23 = vector.load %arg5[%c0_21, %c0_22] : memref<1x32xf32, #tpu.memory_space<vmem>>, vector<1x32xf32>
      %24 = vector.broadcast %23 : vector<1x32xf32> to vector<16x32xf32>
      %25 = arith.addf %22, %24 : vector<16x32xf32>
      %c0_23 = arith.constant 0 : index
      %c0_24 = arith.constant 0 : index
      %26 = vector.load %arg3[%c0_23, %c0_24] : memref<16x32xf32, #tpu.memory_space<vmem>>, vector<16x32xf32>
      %27 = arith.addf %25, %26 : vector<16x32xf32>
      %c0_25 = arith.constant 0 : index
      %c0_26 = arith.constant 0 : index
      %28 = vector.load %arg13[%c0_25, %c0_26] : memref<16x32xf32, #tpu.memory_space<vmem>>, vector<16x32xf32>
      tpu.vector_store %arg13[%c0_25, %c0_26], %27 {strides = array<i32>} : memref<16x32xf32, #tpu.memory_space<vmem>>, vector<16x32xf32>,
      %cst_27 = arith.constant dense<0.000000e+00> : vector<16xf32>
      %29 = vector.multi_reduction <add>, %27, %cst_27 [1] : vector<16x32xf32> to vector<16xf32>
      %30 = vector.shape_cast %29 : vector<16xf32> to vector<16x1xf32>
      %cst_28 = arith.constant 3.200000e+01 : f32
      %31 = vector.broadcast %cst_28 : f32 to vector<16x1xf32>
      %32 = arith.divf %30, %31 : vector<16x1xf32>
      %33 = vector.broadcast %32 : vector<16x1xf32> to vector<16x32xf32>
      %34 = arith.subf %27, %33 : vector<16x32xf32>
      %35 = arith.mulf %34, %34 : vector<16x32xf32>
      %cst_29 = arith.constant dense<0.000000e+00> : vector<16xf32>
      %36 = vector.multi_reduction <add>, %35, %cst_29 [1] : vector<16x32xf32> to vector<16xf32>
      %37 = vector.shape_cast %36 : vector<16xf32> to vector<16x1xf32>
      %cst_30 = arith.constant 3.200000e+01 : f32
      %38 = vector.broadcast %cst_30 : f32 to vector<16x1xf32>
      %39 = arith.divf %37, %38 : vector<16x1xf32>
      %40 = vector.broadcast %32 : vector<16x1xf32> to vector<16x32xf32>
      %41 = arith.subf %27, %40 : vector<16x32xf32>
      %cst_31 = arith.constant 9.99999997E-7 : f32
      %42 = vector.broadcast %cst_31 : f32 to vector<16x1xf32>
      %43 = arith.addf %39, %42 : vector<16x1xf32>
      %44 = math.rsqrt %43 : vector<16x1xf32>
      %45 = vector.broadcast %44 : vector<16x1xf32> to vector<16x32xf32>
      %46 = arith.mulf %41, %45 : vector<16x32xf32>
      %c0_32 = arith.constant 0 : index
      %c0_33 = arith.constant 0 : index
      %47 = vector.load %arg6[%c0_32, %c0_33] : memref<1x32xf32, #tpu.memory_space<vmem>>, vector<1x32xf32>
      %48 = vector.broadcast %47 : vector<1x32xf32> to vector<16x32xf32>
      %49 = arith.mulf %46, %48 : vector<16x32xf32>
      %c0_34 = arith.constant 0 : index
      %c0_35 = arith.constant 0 : index
      %50 = vector.load %arg7[%c0_34, %c0_35] : memref<1x32xf32, #tpu.memory_space<vmem>>, vector<1x32xf32>
      %51 = vector.broadcast %50 : vector<1x32xf32> to vector<16x32xf32>
      %52 = arith.addf %49, %51 : vector<16x32xf32>
      %53 = arith.truncf %52 : vector<16x32xf32> to vector<16x32xbf16>
      %c0_36 = arith.constant 0 : index
      %c0_37 = arith.constant 0 : index
      %54 = vector.load %arg14[%c0_36, %c0_37] : memref<16x32xbf16, #tpu.memory_space<vmem>>, vector<16x32xbf16>
      tpu.vector_store %arg14[%c0_36, %c0_37], %53 {strides = array<i32>} : memref<16x32xbf16, #tpu.memory_space<vmem>>, vector<16x32xbf16>,
      %cst_38 = arith.constant 0.000000e+00 : f32
      %55 = vector.broadcast %cst_38 : f32 to vector<16x32xf32>
      %c0_39 = arith.constant 0 : index
      %c0_40 = arith.constant 0 : index
      %56 = vector.load %arg15[%c0_39, %c0_40] : memref<16x32xf32, #tpu.memory_space<vmem>>, vector<16x32xf32>
      tpu.vector_store %arg15[%c0_39, %c0_40], %55 {strides = array<i32>} : memref<16x32xf32, #tpu.memory_space<vmem>>, vector<16x32xf32>,
    } else {
    }
    %c0 = arith.constant 0 : index
    %c0_1 = arith.constant 0 : index
    %3 = vector.load %arg14[%c0, %c0_1] : memref<16x32xbf16, #tpu.memory_space<vmem>>, vector<16x32xbf16>
    %c0_2 = arith.constant 0 : index
    %c0_3 = arith.constant 0 : index
    %4 = vector.load %arg8[%c0_2, %c0_3] : memref<32x64xbf16, #tpu.memory_space<vmem>>, vector<32x64xbf16>
    %cst = arith.constant dense<0.000000e+00> : vector<16x64xf32>
    %5 = tpu.matmul %3, %4, %cst {dimension_numbers = #tpu.dot_dimension_numbers<[1], [0], [0], [1], [0, 0, 1, 1], [], []>} : vector<16x32xbf16>, vector<32x64xbf16>, vector<16x64xf32> -> vector<16x64xf32>
    %c0_4 = arith.constant 0 : index
    %c0_5 = arith.constant 0 : index
    %6 = vector.load %arg9[%c0_4, %c0_5] : memref<1x64xf32, #tpu.memory_space<vmem>>, vector<1x64xf32>
    %7 = vector.broadcast %6 : vector<1x64xf32> to vector<16x64xf32>
    %8 = arith.addf %5, %7 : vector<16x64xf32>
    %cst_6 = arith.constant 0.000000e+00 : f32
    %9 = vector.broadcast %cst_6 : f32 to vector<16x64xf32>
    %10 = arith.maximumf %8, %9 : vector<16x64xf32>
    %11 = arith.truncf %10 : vector<16x64xf32> to vector<16x64xbf16>
    %c0_7 = arith.constant 0 : index
    %c0_8 = arith.constant 0 : index
    %12 = vector.load %arg15[%c0_7, %c0_8] : memref<16x32xf32, #tpu.memory_space<vmem>>, vector<16x32xf32>
    %c0_9 = arith.constant 0 : index
    %c0_10 = arith.constant 0 : index
    %13 = vector.load %arg10[%c0_9, %c0_10] : memref<64x32xbf16, #tpu.memory_space<vmem>>, vector<64x32xbf16>
    %cst_11 = arith.constant dense<0.000000e+00> : vector<16x32xf32>
    %14 = tpu.matmul %11, %13, %cst_11 {dimension_numbers = #tpu.dot_dimension_numbers<[1], [0], [0], [1], [0, 0, 1, 1], [], []>} : vector<16x64xbf16>, vector<64x32xbf16>, vector<16x32xf32> -> vector<16x32xf32>
    %15 = arith.addf %12, %14 : vector<16x32xf32>
    %c0_12 = arith.constant 0 : index
    %c0_13 = arith.constant 0 : index
    %16 = vector.load %arg15[%c0_12, %c0_13] : memref<16x32xf32, #tpu.memory_space<vmem>>, vector<16x32xf32>
    tpu.vector_store %arg15[%c0_12, %c0_13], %15 {strides = array<i32>} : memref<16x32xf32, #tpu.memory_space<vmem>>, vector<16x32xf32>,
    %c0_i32_14 = arith.constant 0 : i32
    %17 = arith.cmpi eq, %arg1, %c0_i32_14 : i32
    %18 = arith.extui %17 : i1 to i32
    %c0_i32_15 = arith.constant 0 : i32
    %19 = arith.cmpi ne, %18, %c0_i32_15 : i32
    scf.if %19 {
      %c0_16 = arith.constant 0 : index
      %c0_17 = arith.constant 0 : index
      %20 = vector.load %arg15[%c0_16, %c0_17] : memref<16x32xf32, #tpu.memory_space<vmem>>, vector<16x32xf32>
      %c0_18 = arith.constant 0 : index
      %c0_19 = arith.constant 0 : index
      %21 = vector.load %arg11[%c0_18, %c0_19] : memref<1x32xf32, #tpu.memory_space<vmem>>, vector<1x32xf32>
      %22 = vector.broadcast %21 : vector<1x32xf32> to vector<16x32xf32>
      %23 = arith.addf %20, %22 : vector<16x32xf32>
      %c0_20 = arith.constant 0 : index
      %c0_21 = arith.constant 0 : index
      %24 = vector.load %arg13[%c0_20, %c0_21] : memref<16x32xf32, #tpu.memory_space<vmem>>, vector<16x32xf32>
      %25 = arith.addf %23, %24 : vector<16x32xf32>
      %c0_22 = arith.constant 0 : index
      %c0_23 = arith.constant 0 : index
      %26 = vector.load %arg12[%c0_22, %c0_23] : memref<16x32xf32, #tpu.memory_space<vmem>>, vector<16x32xf32>
      tpu.vector_store %arg12[%c0_22, %c0_23], %25 {strides = array<i32>} : memref<16x32xf32, #tpu.memory_space<vmem>>, vector<16x32xf32>,
    } else {
    }
    return
  }
  func.func @transform_0(%arg0: i32, %arg1: i32) -> (i32, i32) {
    %c0_i32 = arith.constant 0 : i32
    %c0_i32_0 = arith.constant 0 : i32
    return %arg0, %c0_i32 : i32, i32
  }
  func.func @transform_1(%arg0: i32, %arg1: i32) -> (i32, i32) {
    %c0_i32 = arith.constant 0 : i32
    %c0_i32_0 = arith.constant 0 : i32
    return %arg0, %c0_i32 : i32, i32
  }
  func.func @transform_2(%arg0: i32, %arg1: i32) -> (i32, i32) {
    %c0_i32 = arith.constant 0 : i32
    %c0_i32_0 = arith.constant 0 : i32
    %c0_i32_1 = arith.constant 0 : i32
    return %c0_i32, %c0_i32_0 : i32, i32
  }
  func.func @transform_3(%arg0: i32, %arg1: i32) -> (i32, i32) {
    %c0_i32 = arith.constant 0 : i32
    %c0_i32_0 = arith.constant 0 : i32
    %c0_i32_1 = arith.constant 0 : i32
    return %c0_i32, %c0_i32_0 : i32, i32
  }
  func.func @transform_4(%arg0: i32, %arg1: i32) -> (i32, i32) {
    %c0_i32 = arith.constant 0 : i32
    %c0_i32_0 = arith.constant 0 : i32
    %c0_i32_1 = arith.constant 0 : i32
    return %c0_i32, %c0_i32_0 : i32, i32
  }
  func.func @transform_5(%arg0: i32, %arg1: i32) -> (i32, i32) {
    %c0_i32 = arith.constant 0 : i32
    %c0_i32_0 = arith.constant 0 : i32
    %c0_i32_1 = arith.constant 0 : i32
    return %c0_i32, %c0_i32_0 : i32, i32
  }
  func.func @transform_6(%arg0: i32, %arg1: i32) -> (i32, i32) {
    %c0_i32 = arith.constant 0 : i32
    %c0_i32_0 = arith.constant 0 : i32
    return %c0_i32, %arg1 : i32, i32
  }
  func.func @transform_7(%arg0: i32, %arg1: i32) -> (i32, i32) {
    %c0_i32 = arith.constant 0 : i32
    %c0_i32_0 = arith.constant 0 : i32
    return %c0_i32, %arg1 : i32, i32
  }
  func.func @transform_8(%arg0: i32, %arg1: i32) -> (i32, i32) {
    %c0_i32 = arith.constant 0 : i32
    %c0_i32_0 = arith.constant 0 : i32
    return %arg1, %c0_i32 : i32, i32
  }
  func.func @transform_9(%arg0: i32, %arg1: i32) -> (i32, i32) {
    %c0_i32 = arith.constant 0 : i32
    %c0_i32_0 = arith.constant 0 : i32
    %c0_i32_1 = arith.constant 0 : i32
    return %c0_i32, %c0_i32_0 : i32, i32
  }
  func.func @transform_10(%arg0: i32, %arg1: i32) -> (i32, i32) {
    %c0_i32 = arith.constant 0 : i32
    %c0_i32_0 = arith.constant 0 : i32
    return %arg0, %c0_i32 : i32, i32
  }
}

</mosaic_0001>

<bundles_post_ra>
// kernel: encoder_layer_forward.4
= control target key start
LH: loop header
LB: loop body
LE: loop exit
PB: predicated region body
PF: predicated region fallthrough
CT: control target
= control target key end

     0   :  { %s790_s15 = smov 0   ;;  %s792_s16 = smov 0   ;;  %s867_s0 = inlined_call_operand.vmem [shape: bf16[2,4,8,8], index: 0, kind: input, shape index: {}]   ;;  %s868_s1 = inlined_call_operand.vmem [shape: bf16[2,4,8,8], index: 1, kind: input, shape index: {}]   ;;  %s869_s2 = inlined_call_operand.vmem [shape: bf16[2,4,8,8], index: 2, kind: input, shape index: {}]   ;;  %s870_s3 = inlined_call_operand.vmem [shape: f32[2,1,8], index: 3, kind: input, shape index: {}]   ;;  %s871_s4 = inlined_call_operand.vmem [shape: bf16[2,4,8,8], index: 4, kind: output, shape index: {}]  }
   0x1   :  { %s794_s17 = smov 0   ;;  %s796_s18 = smov 0  }
   0x2   :  { %s798_s19 = smov 0  }
   0x3 LB: > { %s36_s20 = sadd.s32 1, %s752_s17  ;;  %s40_s21 = sadd.s32 1, %s756_s18  ;;  %s760_s19 = sphi %s798_s19, %s14_s19   ;;  %s756_s18 = sphi %s796_s18, %s875_s18   ;;  %s752_s17 = sphi %s794_s17, %s874_s17   ;;  %s748_s16 = sphi %s792_s16, %s873_s16   ;;  %s744_s15 = sphi %s790_s15, %s872_s15  }
   0x4   : > { %p38_p0 = scmp.ge.s32.totalorder %s36_s20, 4  ;;  %p657_p1 = scmp.ge.s32.totalorder %s760_s19, 1 }
   0x5   : > { %p255_p2 = scmp.lt.s32.totalorder %s760_s19, 9 }
   0x6   : > { %s877_s20 = smov (%p38_p0, %s36_s20), 0  ;;  %s879_s21 = smov (!%p38_p0, %s40_s21), %s756_s18 }
   0x7   : > { %p256_p3 = pnand %p657_p1, %p255_p2  ;;  %p42_p4 = scmp.ge.s32.totalorder %s879_s21, 2 }
   0x8   : > { %p321_p5 = scmp.lt.s32.totalorder (!%p256_p3), %s748_s16, 1  ;;  %p323_p6 = scmp.lt.s32.totalorder (!%p256_p3), %s744_s15, 3 }
   0x9   : > { %s881_s21 = smov (%p42_p4, %s879_s21), 0  ;;  %259 = sbr.rel (%p256_p3) target bundleno = 666 (0x29a), region = 36 }
   0xe   : > { %vm379_vm0 = vcmask 64512   ;;  %v762_v0 = vmov 0.0   ;;  %s883_s16 = smov (!%p321_p5, %s748_s16), 1  ;;  %s885_s15 = smov (!%p323_p6, %s744_s15), 3  ;;  %v763_v4 = vmov 0   ;;  %vm376_vm1 = vcmask 7168  }
   0xf   : > { %380 = vst.msk [vmem:[#allocation4] sm:$0xff] %vm379_vm0, %v762_v0  ;;  %s658_s22 = sshll.u32 %s883_s16, 2  ;;  %713 = vset.pattern.permute.xlu0 %v763_v4  ;;  %715 = vset.pattern.permute.xlu2 %v763_v4  ;;  %v764_v5 = vmov -inf   ;;  %s359_s7 = scalar_lea.vmem %s870_s3, %s883_s16  ;;  %vm446_vm4 = vcmask 1043456   ;;  %vm492_vm9 = vcmask 60416  }
  0x10   : > { %s329_s23 = sadd.s32 %s658_s22, %s885_s15  ;;  %714 = vset.pattern.permute.xlu1 %v763_v4  ;;  %377 = vst.msk [vmem:[#allocation2] sm:$0xff] %vm376_vm1, %v764_v5  ;;  %v404_v6 = vld [vmem:[%s359_s7] sm:$0x1] }
  0x11   : > { %s821_s24 = sshll.u32 %s329_s23, 2  ;;  %378 = vst.msk [vmem:[#allocation3] sm:$0xff] %vm376_vm1, %v762_v0  ;;  %vm405_vm2 = vcmp.gt.f32.partialorder %v404_v6, 0.0 }
  0x12   : > { %s342_s27 = scalar_lea.vmem %s868_s1, %s821_s24  ;;  %s331_s30 = scalar_lea.vmem %s867_s0, %s821_s24  ;;  %v406_v7 = vsel %vm405_vm2, 1, %v763_v4 }
  0x13   : > { %v382_v1 = vld [vmem:[%s342_s27] sm:$0xf]  ;;  %v407_v8 = vperm.slane %v406_v7, 0  ;;  %s353_s10 = scalar_lea.vmem %s869_s2, %s821_s24  ;;  %s370_s13 = scalar_lea.vmem %s871_s4, %s821_s24 }
  0x14   : > { %v388_v2 = vsel %vm379_vm0, %v382_v1, 0  ;;  %v381_v3 = vld [vmem:[%s331_s30] sm:$0xf] }
  0x15   : > { %397 = vmatpush.bf16.xpose.msra.mxu0 %v388_v2  ;;  %vm408_vm3 = vcmp.eq.s32.totalorder %v407_v8, 1  ;;  %v442_v20 = vld [vmem:[%s353_s10] sm:$0xf] }
  0x16   : > { %v448_v21 = vsel %vm446_vm4, %v442_v20, 0  ;;  %v434_v32 = vld [vmem:[#allocation4] sm:$0xff] }
  0x17   : > { %v410_v14 = vld [vmem:[#allocation2] sm:$0xff]  ;;  %457 = vmatpush.bf16.msra.mxu1 %v448_v21 }
  0x18   : > { %v426_v28 = vld [vmem:[#allocation3] sm:$0xff] }
  0x1c   : > { %666 = vmatmul.msk.bf16.vlgmr.msra.gmra.mxu0 %vm379_vm0, %v381_v3 }
  0x99   : > { %v399_v9 = vpop.f32.mrf.mxu0 }
  0x9a   : > { %v403_v10 = vmul.f32 0.35355338, %v399_v9 }
  0x9c   : > { %v409_v11 = vsel %vm408_vm3, %v403_v10, -1e+09 }
  0x9d   : > { %v411_v12 = vsel %vm379_vm0, %v409_v11, -inf }
  0x9e   : > { %412 = vmax.xlane.f32.xlu0 %v411_v12 }
  0xa1   : > { %v401_v13 = vpop.f32.mrf.mxu0 }
 0x111   : > { %v413_v15 = vpop.xlane.xlu0 %412 }
 0x112   : > { %v414_v16 = vmax.f32 %v410_v14, %v413_v15 }
 0x114   : > { %v415_v17 = vsub.f32 %v410_v14, %v414_v16  ;;  %465 = vst.msk [vmem:[#allocation2] sm:$0xff] %vm376_vm1, %v414_v16  ;;  %420 = vperm.xlu0 %713, %v414_v16  }
 0x116   : > { %v416_v18 = vmul.f32 1.442695, %v415_v17 }
 0x118   : > { %716 = vpow2.f32 %v416_v18 }
 0x11e   : > { %v717_v19 = vpop.eup %716 }
 0x11f   : > { %437 = vperm.xlu2 %715, %v717_v19   ;;  %v427_v29 = vmul.f32 %v717_v19, %v426_v28 }
 0x179   : > { %v438_v33 = vpop.permute.xlu2 %437 }
 0x17a   : > { %v440_v34 = vmul.f32 %v438_v33, %v434_v32 }
 0x186   : > { %v421_v22 = vpop.permute.xlu0 %420 }
 0x187   : > { %v423_v23 = vsub.f32 %v409_v11, %v421_v22 }
 0x189   : > { %v424_v24 = vmul.f32 1.442695, %v423_v23 }
 0x18b   : > { %718 = vpow2.f32 %v424_v24 }
 0x191   : > { %v719_v25 = vpop.eup %718 }
 0x192   : > { %v428_v26 = vsel %vm379_vm0, %v719_v25, 0.0  ;;  %v441_v27 = vpack.c.bf16 %v719_v25, %v719_v25 }
 0x193   : > { %429 = vadd.xlane.f32.xlu1 %v428_v26 }
 0x194   : > { %667 = vmatmul.msk.bf16.vlgmr.msra.gmra.mxu1 %vm379_vm0, %v441_v27 }
 0x206   : > { %v430_v30 = vpop.xlane.xlu1 %429 }
 0x207   : > { %v431_v31 = vadd.f32 %v430_v30, %v427_v29 }
 0x209   : > { %433 = vst.msk [vmem:[#allocation3] sm:$0xff] %vm376_vm1, %v431_v31 }
 0x210   : > { %v470_v35 = vld [vmem:[#allocation3] sm:$0xff] }
 0x211   : > { %v459_v36 = vpop.f32.mrf.mxu1  ;;  %473 = vperm.xlu1 %714, %v470_v35  }
 0x212   : > { %v463_v37 = vadd.f32 %v459_v36, %v440_v34 }
 0x214   : > { %464 = vst.msk [vmem:[#allocation4] sm:$0xff] %vm379_vm0, %v463_v37 }
 0x219   : > { %v461_v38 = vpop.f32.mrf.mxu1 }
 0x21b   : > { %v469_v49 = vld [vmem:[#allocation4] sm:$0xff] }
 0x283   : > { %v474_v39 = vpop.permute.xlu1 %473 }
 0x284   : > { %720 = vrcp.f32 %v474_v39  ;;  %v487_v43 = vand.u32 2147483648, %v474_v39  ;;  %v485_v45 = vand.u32 2147483647, %v474_v39  ;;  %vm481_vm6 = vweird.f32 %v474_v39 }
 0x286   : > { %v488_v47 = vor.u32 1.1754944e-38, %v487_v43  ;;  %vm486_vm8 = vcmp.eq.f32.partialorder %v485_v45, 8.507059e+37 }
 0x28a   : > { %v721_v40 = vpop.eup %720 }
 0x28b   : > { %v477_v41 = vmul.f32 %v721_v40, %v474_v39  ;;  %vm482_vm5 = vweird.f32 %v721_v40 }
 0x28c   : > { %vm483_vm7 = vmor %vm481_vm6, %vm482_vm5 }
 0x28d   : > { %v478_v42 = vsub.f32 1.0, %v477_v41 }
 0x28f   : > { %v479_v44 = vmul.f32 %v721_v40, %v478_v42 }
 0x291   : > { %v480_v46 = vadd.f32 %v721_v40, %v479_v44 }
 0x293   : > { %v484_v48 = vsel %vm483_vm7, %v721_v40, %v480_v46 }
 0x294   : > { %v489_v50 = vsel %vm486_vm8, %v488_v47, %v484_v48 }
 0x295   : > { %v490_v51 = vmul.f32 %v489_v50, %v469_v49 }
 0x297   : > { %v491_v52 = vpack.c.bf16 %v490_v51, %v490_v51 }
 0x299   : > { %493 = vst.msk [vmem:[%s370_s13] sm:$0xf] %vm492_vm9, %v491_v52 }
 0x29a PF: > { %s14_s19 = sadd.s32 1, %s760_s19   ;;  %s872_s15 = smov %s752_s17 }
 0x29b   : > { %p11_p7 = scmp.ge.s32.totalorder %s14_s19, 10   ;;  %s873_s16 = smov %s756_s18 }
 0x29c   : > { %s874_s17 = smov %s877_s20  ;;  %s875_s18 = smov %s881_s21 }
 0x29d   :  { %13 = sbr.rel (!%p11_p7) target bundleno = 3 (0x3), region = 83 }

// kernel: encoder_layer_forward.3
= control target key start
LH: loop header
LB: loop body
LE: loop exit
PB: predicated region body
PF: predicated region fallthrough
CT: control target
= control target key end

     0   :  { %vm23_vm0 = vcmask 261120   ;;  %v155_v4 = vmov 32.0   ;;  %vm127_vm8 = vcmask 781312   ;;  %s218_s0 = inlined_call_operand.vmem [shape: f32[16,32], index: 0, kind: input, shape index: {}]   ;;  %s219_s1 = inlined_call_operand.vmem [shape: f32[1,32], index: 1, kind: input, shape index: {}]   ;;  %s220_s2 = inlined_call_operand.vmem [shape: f32[1,32], index: 2, kind: input, shape index: {}]   ;;  %s221_s4 = inlined_call_operand.vmem [shape: f32[1,96], index: 4, kind: input, shape index: {}]   ;;  %s222_s3 = inlined_call_operand.vmem [shape: bf16[32,96], index: 3, kind: input, shape index: {}]   ;;  %s223_s5 = inlined_call_operand.vmem [shape: bf16[16,96], index: 5, kind: output, shape index: {}]  }
   0x1   :  { %v21_v0 = vld [vmem:[%s218_s0] sm:$0xff]  ;;  %v22_v2 = vld [vmem:[%s218_s0 + $0x8] sm:$0xff]  ;;  %149 = vrcp.f32 %v155_v4 }
   0x2   :  { %v24_v1 = vsel %vm23_vm0, %v21_v0, 0.0  ;;  %v27_v3 = vsel %vm23_vm0, %v22_v2, 0.0  ;;  %v144_v21 = vld [vmem:[%s222_s3 + $0x8] sm:$0xff]  ;;  %v143_v23 = vld [vmem:[%s222_s3] sm:$0xff] }
   0x3   :  { %25 = vadd.xlane.f32.xlu0 %v24_v1  ;;  %117 = vmatpush.bf16.msra.mxu0 %v144_v21  ;;  %v146_v42 = vld [vmem:[%s219_s1] ss:$0 sm:$0xff] }
   0x4   :  { %v147_v47 = vld [vmem:[%s220_s2] ss:$0 sm:$0xff] }
   0x5   :  { %v148_v52 = vld [vmem:[%s221_s4] ss:$0 sm:$0xff] }
   0x7   :  { %v150_v5 = vpop.eup %149  ;;  %118 = vmatpush.bf16.msra.mxu0 %v143_v23 }
   0x8   :  { %v31_v6 = vmul.f32 32.0, %v150_v5  ;;  %vm35_vm1 = vweird.f32 %v150_v5 }
   0xa   :  { %v32_v7 = vsub.f32 1.0, %v31_v6 }
   0xb   :  { %28 = vadd.xlane.f32.xlu0 %v27_v3 }
   0xc   :  { %v33_v8 = vmul.f32 %v150_v5, %v32_v7 }
   0xe   :  { %v34_v9 = vadd.f32 %v150_v5, %v33_v8 }
  0x10   :  { %v36_v10 = vsel %vm35_vm1, %v150_v5, %v34_v9 }
  0x76   :  { %v26_v11 = vpop.xlane.xlu0 %25 }
  0x77   :  { %v37_v12 = vmul.f32 %v36_v10, %v26_v11 }
  0x79   :  { %v39_v13 = vsub.f32 %v21_v0, %v37_v12 }
  0x7b   :  { %v41_v14 = vmul.f32 %v39_v13, %v39_v13 }
  0x7d   :  { %v43_v15 = vsel %vm23_vm0, %v41_v14, 0.0 }
  0x7e   :  { %44 = vadd.xlane.f32.xlu1 %v43_v15  ;;  %v29_v16 = vpop.xlane.xlu0 %28 }
  0x7f   :  { %v38_v17 = vmul.f32 %v36_v10, %v29_v16 }
  0x81   :  { %v40_v18 = vsub.f32 %v22_v2, %v38_v17 }
  0x83   :  { %v42_v19 = vmul.f32 %v40_v18, %v40_v18 }
  0x85   :  { %v46_v20 = vsel %vm23_vm0, %v42_v19, 0.0 }
  0x86   :  { %47 = vadd.xlane.f32.xlu1 %v46_v20 }
  0xf1   :  { %v45_v22 = vpop.xlane.xlu1 %44 }
  0xf2   :  { %v49_v24 = vmul.f32 %v45_v22, %v36_v10 }
  0xf4   :  { %v51_v25 = vadd.f32 1e-06, %v49_v24 }
  0xf6   :  { %151 = vrsqrt.f32 %v51_v25  ;;  %vm59_vm3 = vweird.f32 %v51_v25 }
  0xf9   :  { %v48_v26 = vpop.xlane.xlu1 %47 }
  0xfa   :  { %v50_v27 = vmul.f32 %v48_v26, %v36_v10 }
  0xfc   :  { %v152_v28 = vpop.eup %151  ;;  %v52_v29 = vadd.f32 1e-06, %v50_v27 }
  0xfd   :  { %v54_v30 = vmul.f32 %v152_v28, %v51_v25  ;;  %vm60_vm2 = vweird.f32 %v152_v28 }
  0xfe   :  { %153 = vrsqrt.f32 %v52_v29  ;;  %vm61_vm4 = vmor %vm59_vm3, %vm60_vm2  ;;  %vm69_vm6 = vweird.f32 %v52_v29 }
  0xff   :  { %v55_v31 = vmul.f32 %v152_v28, %v54_v30 }
 0x101   :  { %v56_v32 = vmul.f32 0.5, %v55_v31 }
 0x103   :  { %v57_v33 = vsub.f32 1.5, %v56_v32 }
 0x104   :  { %v154_v34 = vpop.eup %153 }
 0x105   :  { %v58_v35 = vmul.f32 %v152_v28, %v57_v33  ;;  %v64_v36 = vmul.f32 %v154_v34, %v52_v29  ;;  %vm70_vm5 = vweird.f32 %v154_v34 }
 0x106   :  { %vm71_vm7 = vmor %vm69_vm6, %vm70_vm5 }
 0x107   :  { %v65_v37 = vmul.f32 %v154_v34, %v64_v36  ;;  %v62_v38 = vsel %vm61_vm4, %v152_v28, %v58_v35 }
 0x108   :  { %v73_v41 = vmul.f32 %v62_v38, %v39_v13 }
 0x109   :  { %v66_v39 = vmul.f32 0.5, %v65_v37 }
 0x10a   :  { %v79_v46 = vmul.f32 %v146_v42, %v73_v41 }
 0x10b   :  { %v67_v40 = vsub.f32 1.5, %v66_v39 }
 0x10c   :  { %v85_v49 = vadd.f32 %v147_v47, %v79_v46 }
 0x10d   :  { %v68_v43 = vmul.f32 %v154_v34, %v67_v40 }
 0x10f   :  { %v72_v44 = vsel %vm71_vm7, %v154_v34, %v68_v43 }
 0x110   :  { %v74_v45 = vmul.f32 %v72_v44, %v40_v18 }
 0x112   :  { %v80_v48 = vmul.f32 %v146_v42, %v74_v45 }
 0x114   :  { %v86_v50 = vadd.f32 %v147_v47, %v80_v48 }
 0x116   :  { %v87_v51 = vpack.c.bf16 %v86_v50, %v85_v49 }
 0x118   :  { %142 = vmatmul.msk.bf16.vlgmr.msra.gmra.mxu0 %vm23_vm0, %v87_v51 }
 0x195   :  { %v120_v53 = vpop.f32.mrf.mxu0 }
 0x196   :  { %v121_v54 = vadd.f32 %v148_v52, %v120_v53 }
 0x198   :  { %v125_v55 = vpack.c.bf16 %v121_v54, %v121_v54 }
 0x19a   :  { %128 = vst.msk [vmem:[%s223_s5] sm:$0xf] %vm127_vm8, %v125_v55 }
 0x19d   :  { %v122_v56 = vpop.f32.mrf.mxu0 }
 0x19e   :  { %v123_v57 = vadd.f32 %v148_v52, %v122_v56 }
 0x1a0   :  { %v126_v58 = vpack.c.bf16 %v123_v57, %v123_v57 }
 0x1a2   :  { %129 = vst.msk [vmem:[%s223_s5 + $0x4] sm:$0xf] %vm127_vm8, %v126_v58 }

// kernel: encoder_layer_forward.5
= control target key start
LH: loop header
LB: loop body
LE: loop exit
PB: predicated region body
PF: predicated region fallthrough
CT: control target
= control target key end

     0   :  { %s521_s0 = inlined_call_operand.vmem [shape: bf16[16,32], index: 0, kind: input, shape index: {}]   ;;  %s522_s1 = inlined_call_operand.vmem [shape: f32[16,32], index: 1, kind: input, shape index: {}]   ;;  %s523_s2 = inlined_call_operand.vmem [shape: bf16[32,32], index: 2, kind: input, shape index: {}]   ;;  %s524_s3 = inlined_call_operand.vmem [shape: f32[1,32], index: 3, kind: input, shape index: {}]   ;;  %s525_s4 = inlined_call_operand.vmem [shape: f32[1,32], index: 4, kind: input, shape index: {}]   ;;  %s526_s5 = inlined_call_operand.vmem [shape: f32[1,32], index: 5, kind: input, shape index: {}]   ;;  %s527_s6 = inlined_call_operand.vmem [shape: bf16[32,64], index: 6, kind: input, shape index: {}]   ;;  %s528_s7 = inlined_call_operand.vmem [shape: f32[1,64], index: 7, kind: input, shape index: {}]   ;;  %s529_s8 = inlined_call_operand.vmem [shape: bf16[64,32], index: 8, kind: input, shape index: {}]   ;;  %s530_s9 = inlined_call_operand.vmem [shape: f32[1,32], index: 9, kind: input, shape index: {}]   ;;  %s531_s10 = inlined_call_operand.hbm [shape: f32[16,32], index: 10, kind: output, shape index: {}]  }
   0x1   :  { %v346_v0 = vld [vmem:[%s523_s2 + $0x8] sm:$0xff]  ;;  %v345_v1 = vld [vmem:[%s523_s2] sm:$0xff] }
   0x2   :  { %78 = vmatpush.bf16.msra.mxu0 %v346_v0 }
   0x3   :  { %15 = vsyncpa [#allocation6], 0  ;;  %v344_v2 = vld [vmem:[%s521_s0] sm:$0xff]  ;;  %vm68_vm0 = vcmask 261120   ;;  %v87_v10 = vld [vmem:[%s522_s1 + $0x8] sm:$0xff]  ;;  %v396_v14 = vmov 32.0  }
   0x4   :  { %v359_v3 = vld [vmem:[%s524_s3] ss:$0 sm:$0xff]  ;;  %364 = vrcp.f32 %v396_v14  ;;  %v349_v34 = vld [vmem:[%s527_s6 + $0x8] sm:$0xff]  ;;  %vm157_vm6 = vcmask 257024   ;;  %v353_v0 = vld [vmem:[%s529_s8 + $0x18] sm:$0xff]  ;;  %vm244_vm9 = vcmask 523264  }
   0x5   :  { %v86_v5 = vld [vmem:[%s522_s1] sm:$0xff]  ;;  %199 = vmatpush.bf16.msra.mxu1 %v349_v34  ;;  %252 = vmatpush.bf16.msra.mxu2 %v353_v0  ;;  %s289_s20 = sshll.u32 %s531_s10, 4  ;;  %s400_s21 = smov 8   ;;  %s290_s20 = int_to_ptr.hbm [resolvable:$true] %s289_s20 }
   0x6   :  { %79 = vmatpush.bf16.msra.mxu0 %v345_v1  ;;  %v348_v37 = vld [vmem:[%s527_s6] sm:$0xff]  ;;  %v352_v1 = vld [vmem:[%s529_s8 + $0x10] sm:$0xff] }
   0x7   :  { %v360_v47 = vld [vmem:[%s525_s4] ss:$0 sm:$0xff] }
   0x8   :  { %v361_v50 = vld [vmem:[%s526_s5] ss:$0 sm:$0xff] }
   0x9   :  { %313 = vmatmul.msk.bf16.vlgmr.msra.gmra.mxu0 %vm68_vm0, %v344_v2  ;;  %200 = vmatpush.bf16.msra.mxu1 %v348_v37  ;;  %v351_v2 = vld [vmem:[%s529_s8 + $0x8] sm:$0xff] }
   0xa   :  { %v365_v15 = vpop.eup %364  ;;  %253 = vmatpush.bf16.msra.mxu2 %v352_v1 }
   0xb   :  { %v99_v16 = vmul.f32 32.0, %v365_v15  ;;  %vm103_vm1 = vweird.f32 %v365_v15 }
   0xd   :  { %v100_v17 = vsub.f32 1.0, %v99_v16 }
   0xe   :  { %254 = vmatpush.bf16.msra.mxu2 %v351_v2 }
   0xf   :  { %v101_v18 = vmul.f32 %v365_v15, %v100_v17  ;;  %v363_v17 = vld [vmem:[%s530_s9] ss:$0 sm:$0xff]  ;;  %s399_s9 = smov 128  }
  0x11   :  { %v102_v19 = vadd.f32 %v365_v15, %v101_v18 }
  0x13   :  { %v104_v20 = vsel %vm103_vm1, %v365_v15, %v102_v19 }
  0x86   :  { %v81_v4 = vpop.f32.mrf.mxu0 }
  0x87   :  { %v82_v6 = vadd.f32 %v359_v3, %v81_v4  ;;  %v397_v4 = vmov 0.0  }
  0x88   :  { %160 = vst.msk [vmem:[#allocation4] sm:$0xff] %vm68_vm0, %v397_v4 }
  0x89   :  { %v88_v7 = vadd.f32 %v86_v5, %v82_v6  ;;  %161 = vst.msk [vmem:[#allocation4 + $0x8] sm:$0xff] %vm68_vm0, %v397_v4  ;;  %v362_v6 = vld [vmem:[%s528_s7] ss:$0 sm:$0xff]  ;;  %s398_s7 = smov [#allocation5]  }
  0x8a   :  { %s287_s17 = sshll.u32 %s398_s7, 4  ;;  %s288_s17 = int_to_ptr.vmem [resolvable:$true] %s287_s17 }
  0x8b   :  { %90 = vst.msk [vmem:[#allocation2] sm:$0xff] %vm68_vm0, %v88_v7  ;;  %v92_v8 = vsel %vm68_vm0, %v88_v7, 0.0 }
  0x8c   :  { %93 = vadd.xlane.f32.xlu0 %v92_v8 }
  0x8e   :  { %v83_v9 = vpop.f32.mrf.mxu0 }
  0x8f   :  { %v84_v11 = vadd.f32 %v359_v3, %v83_v9  ;;  %v350_v3 = vld [vmem:[%s529_s8] sm:$0xff] }
  0x90   :  { %255 = vmatpush.bf16.msra.mxu2 %v350_v3  ;;  %v211_v16 = vld [vmem:[#allocation4 + $0x8] sm:$0xff] }
  0x91   :  { %v89_v12 = vadd.f32 %v87_v10, %v84_v11 }
  0x93   :  { %91 = vst.msk [vmem:[#allocation2 + $0x8] sm:$0xff] %vm68_vm0, %v89_v12  ;;  %v95_v13 = vsel %vm68_vm0, %v89_v12, 0.0 }
  0x94   :  { %96 = vadd.xlane.f32.xlu0 %v95_v13  ;;  %v210_v13 = vld [vmem:[#allocation4] sm:$0xff] }
  0xff   :  { %v94_v21 = vpop.xlane.xlu0 %93 }
 0x100   :  { %v105_v22 = vmul.f32 %v104_v20, %v94_v21 }
 0x102   :  { %v107_v23 = vsub.f32 %v88_v7, %v105_v22  ;;  %v277_v22 = vld [vmem:[#allocation2] sm:$0xff] }
 0x104   :  { %v109_v24 = vmul.f32 %v107_v23, %v107_v23 }
 0x106   :  { %v111_v25 = vsel %vm68_vm0, %v109_v24, 0.0 }
 0x107   :  { %112 = vadd.xlane.f32.xlu1 %v111_v25  ;;  %v97_v26 = vpop.xlane.xlu0 %96 }
 0x108   :  { %v106_v27 = vmul.f32 %v104_v20, %v97_v26  ;;  %v278_v26 = vld [vmem:[#allocation2 + $0x8] sm:$0xff] }
 0x10a   :  { %v108_v28 = vsub.f32 %v89_v12, %v106_v27 }
 0x10c   :  { %v110_v29 = vmul.f32 %v108_v28, %v108_v28 }
 0x10e   :  { %v114_v30 = vsel %vm68_vm0, %v110_v29, 0.0 }
 0x10f   :  { %115 = vadd.xlane.f32.xlu1 %v114_v30 }
 0x17a   :  { %v113_v31 = vpop.xlane.xlu1 %112 }
 0x17b   :  { %v117_v32 = vmul.f32 %v113_v31, %v104_v20 }
 0x17d   :  { %v119_v33 = vadd.f32 1e-06, %v117_v32 }
 0x17f   :  { %366 = vrsqrt.f32 %v119_v33  ;;  %vm127_vm3 = vweird.f32 %v119_v33 }
 0x182   :  { %v116_v35 = vpop.xlane.xlu1 %115 }
 0x183   :  { %v118_v36 = vmul.f32 %v116_v35, %v104_v20 }
 0x185   :  { %v367_v38 = vpop.eup %366  ;;  %v120_v39 = vadd.f32 1e-06, %v118_v36 }
 0x186   :  { %v122_v40 = vmul.f32 %v367_v38, %v119_v33  ;;  %vm128_vm2 = vweird.f32 %v367_v38 }
 0x187   :  { %368 = vrsqrt.f32 %v120_v39  ;;  %vm129_vm4 = vmor %vm127_vm3, %vm128_vm2  ;;  %vm137_vm7 = vweird.f32 %v120_v39 }
 0x188   :  { %v123_v41 = vmul.f32 %v367_v38, %v122_v40 }
 0x18a   :  { %v124_v42 = vmul.f32 0.5, %v123_v41 }
 0x18c   :  { %v125_v43 = vsub.f32 1.5, %v124_v42 }
 0x18d   :  { %v369_v44 = vpop.eup %368 }
 0x18e   :  { %v126_v45 = vmul.f32 %v367_v38, %v125_v43  ;;  %v132_v46 = vmul.f32 %v369_v44, %v120_v39  ;;  %vm138_vm5 = vweird.f32 %v369_v44 }
 0x18f   :  { %vm139_vm8 = vmor %vm137_vm7, %vm138_vm5 }
 0x190   :  { %v130_v48 = vsel %vm129_vm4, %v367_v38, %v126_v45  ;;  %v133_v49 = vmul.f32 %v369_v44, %v132_v46 }
 0x191   :  { %v141_v51 = vmul.f32 %v130_v48, %v107_v23 }
 0x192   :  { %v134_v52 = vmul.f32 0.5, %v133_v49 }
 0x193   :  { %v147_v53 = vmul.f32 %v360_v47, %v141_v51 }
 0x194   :  { %v135_v54 = vsub.f32 1.5, %v134_v52 }
 0x195   :  { %v153_v55 = vadd.f32 %v361_v50, %v147_v53 }
 0x196   :  { %v136_v56 = vmul.f32 %v369_v44, %v135_v54 }
 0x197   :  { %v155_v57 = vpack.c.bf16 %v153_v55, %v153_v55 }
 0x198   :  { %v140_v58 = vsel %vm139_vm8, %v369_v44, %v136_v56 }
 0x199   :  { %158 = vst.msk [vmem:[#allocation3] sm:$0xf] %vm157_vm6, %v155_v57  ;;  %v142_v59 = vmul.f32 %v140_v58, %v108_v28 }
 0x19b   :  { %v148_v60 = vmul.f32 %v360_v47, %v142_v59 }
 0x19d   :  { %v154_v61 = vadd.f32 %v361_v50, %v148_v60 }
 0x19f   :  { %v156_v62 = vpack.c.bf16 %v154_v61, %v154_v61 }
 0x1a1   :  { %159 = vst.msk [vmem:[#allocation3 + $0x4] sm:$0xf] %vm157_vm6, %v156_v62 }
 0x1a8   :  { %v347_v63 = vld [vmem:[#allocation3] sm:$0xff] }
 0x1a9   :  { %326 = vmatmul.msk.bf16.vlgmr.msra.gmra.mxu1 %vm68_vm0, %v347_v63 }
 0x226   :  { %v202_v5 = vpop.f32.mrf.mxu1 }
 0x227   :  { %v203_v7 = vadd.f32 %v362_v6, %v202_v5 }
 0x229   :  { %v207_v10 = vmax.f32 %v203_v7, 0.0 }
 0x22e   :  { %v204_v8 = vpop.f32.mrf.mxu1 }
 0x22f   :  { %v205_v9 = vadd.f32 %v362_v6, %v204_v8 }
 0x231   :  { %v208_v11 = vmax.f32 %v205_v9, 0.0 }
 0x233   :  { %v209_v12 = vpack.c.bf16 %v208_v11, %v207_v10 }
 0x235   :  { %343 = vmatmul.msk.bf16.vlgmr.msra.gmra.mxu2 %vm244_vm9, %v209_v12 }
 0x2b8   :  { %v257_v14 = vpop.f32.mrf.mxu2 }
 0x2b9   :  { %v262_v15 = vadd.f32 %v257_v14, %v210_v13 }
 0x2bb   :  { %264 = vst.msk [vmem:[#allocation4] sm:$0xff] %vm68_vm0, %v262_v15 }
 0x2c0   :  { %v259_v18 = vpop.f32.mrf.mxu2 }
 0x2c1   :  { %v263_v19 = vadd.f32 %v259_v18, %v211_v16 }
 0x2c2   :  { %v269_v20 = vld [vmem:[#allocation4] sm:$0xff] }
 0x2c3   :  { %265 = vst.msk [vmem:[#allocation4 + $0x8] sm:$0xff] %vm68_vm0, %v263_v19  ;;  %v275_v21 = vadd.f32 %v363_v17, %v269_v20 }
 0x2c5   :  { %v279_v23 = vadd.f32 %v277_v22, %v275_v21 }
 0x2c7   :  { %281 = vst.msk [vmem:[#allocation5] sm:$0xff] %vm68_vm0, %v279_v23 }
 0x2ca   :  { %v270_v24 = vld [vmem:[#allocation4 + $0x8] sm:$0xff] }
 0x2cb   :  { %v276_v25 = vadd.f32 %v363_v17, %v270_v24 }
 0x2cd   :  { %v280_v27 = vadd.f32 %v278_v26, %v276_v25 }
 0x2cf   :  { %282 = vst.msk [vmem:[#allocation5 + $0x8] sm:$0xff] %vm68_vm0, %v280_v27 }
 0x2d0   :  { %295 = dma.vmem_to_hbm [thread:$0]  %s288_s17, 256, %s290_s20, [#allocation6], %s399_s9, %s399_s9, %s400_s21  }
 0x2d1   :  { %394 = dma.done.wait [#allocation6], 256  }
 0x2d2   :  { %395 = vsyncadd [#allocation6], 4294967040 }
 0x2d3   :  { %300 = vsyncpa [#allocation6], 1 }

</bundles_post_ra>
